<compile_context>
chip_gen: v6e
topology: v6e:2x2x1
jax: 0.10.0
libtpu: 0.0.40
codegen_flags: <defaults>
</compile_context>

<pallas_src>
import jax
import jax.numpy as jnp
from jax import lax
from jax.experimental import pallas as pl
from jax.experimental.pallas import tpu as pltpu

# ----- config (small, consistent with the module) -----
N_EMBD = 32
N_HEAD = 4
HEAD_SIZE = N_EMBD // N_HEAD
BLOCK_SIZE = 8          # max sequence length
BATCH = 2
SEQ = 8                 # T <= BLOCK_SIZE
LN_EPS = 1e-5


def _make_block_kernel(B, T, C, n_head):
    hs = C // n_head
    BT = B * T
    BH = B * n_head

    def block_kernel(x_ref, lnb_ref, wqkv_ref, wp_ref, b1_ref, w1_ref, w2_ref,
                     o_ref):
        f32 = jnp.float32
        bf16 = jnp.bfloat16
        x = x_ref[...].astype(f32)                           # (BT, C)

        def layernorm(v, g, b):
            mu = jnp.mean(v, axis=-1, keepdims=True)
            var = jnp.mean((v - mu) ** 2, axis=-1, keepdims=True)
            return (v - mu) * lax.rsqrt(var + LN_EPS) * g + b

        ln1_g = lnb_ref[0:1, :]
        ln1_b = lnb_ref[1:2, :]
        ln2_g = lnb_ref[2:3, :]
        ln2_b = lnb_ref[3:4, :]
        bp = lnb_ref[4:5, :]
        b2 = lnb_ref[5:6, :]

        # ---- self-attention branch: sa(ln1(x)) ----
        h = layernorm(x, ln1_g, ln1_b)                       # (BT, C) f32

        # Head-batched QKV projection: one batched matmul over 3*n_head
        # weight slabs; 1/sqrt(hs) is folded into the Q weights host-side.
        h_b = jnp.broadcast_to(h.astype(bf16)[None], (3 * n_head, BT, C))
        qkv = jnp.einsum("hnc,hcd->hnd", h_b, wqkv_ref[...],
                         preferred_element_type=f32)         # (3H, BT, hs)

        # Leading-dim slices + sublane-aligned reshapes only (no lane slicing,
        # no transposes):  (h, b*T + t, d) -> (h*B + b, t, d)
        q = qkv[0 * n_head:1 * n_head].reshape(BH, T, hs)
        k = qkv[1 * n_head:2 * n_head].reshape(BH, T, hs)
        v = qkv[2 * n_head:3 * n_head].reshape(BH, T, hs)

        # Scores: batched contraction on the feature dim (no K transpose).
        s = jnp.einsum("bqd,bkd->bqk", q.astype(bf16), k.astype(bf16),
                       preferred_element_type=f32)           # (BH, T, T)

        # Causal mask generated in-kernel (no O((BT)^2) bias input).
        row = lax.broadcasted_iota(jnp.int32, (BH, T, T), 1)
        col = lax.broadcasted_iota(jnp.int32, (BH, T, T), 2)
        s = jnp.where(col <= row, s, -1e30)

        # Softmax (f32, EUP reciprocal); dropout on weights = identity (eval).
        s = s - jnp.max(s, axis=-1, keepdims=True)
        p = jnp.exp(s)
        p = p * pl.reciprocal(jnp.sum(p, axis=-1, keepdims=True), approx=True)

        oh = jnp.einsum("bqk,bkd->bqd", p.astype(bf16), v.astype(bf16),
                        preferred_element_type=f32)          # (BH, T, hs)

        # Output projection: batched over heads + leading-axis reduce
        # (no serial running-sum chain, no lane-axis concatenate).
        ohh = oh.reshape(n_head, BT, hs)                     # (H, BT, hs)
        sa = jnp.einsum("hnd,hdc->hnc", ohh.astype(bf16), wp_ref[...],
                        preferred_element_type=f32)          # (H, BT, C)
        sa = jnp.sum(sa, axis=0) + bp                        # (BT, C)
        x = x + sa                                           # residual 1

        # ---- feed-forward branch: ff(ln2(x)) ----
        h2 = layernorm(x, ln2_g, ln2_b)
        ff = jnp.dot(h2.astype(bf16), w1_ref[...],
                     preferred_element_type=f32) + b1_ref[...]
        ff = jnp.maximum(ff, 0.0)                            # ReLU (f32)
        ff = jnp.dot(ff.astype(bf16), w2_ref[...],
                     preferred_element_type=f32) + b2
        # dropout in feed_forward is identity (eval mode)
        x = x + ff                                           # residual 2

        o_ref[...] = x.astype(o_ref.dtype)

    return block_kernel


def transformer_block(x, params):
    """x: (B, T, C) float32.  params: dict of weights (see init_params)."""
    B, T, C = x.shape
    BT = B * T
    n_head = N_HEAD
    hs = C // n_head
    x_flat = x.reshape(BT, C)

    # --- host-side weight reorganization (cheap one-time XLA work) ---
    scale = float(hs) ** -0.5

    def to_heads(w):  # (C, C) -> (n_head, C, hs), head-major along dim 0
        return w.reshape(C, n_head, hs).transpose(1, 0, 2)

    wqkv_h = jnp.concatenate(
        [to_heads(params["wq"] * scale),          # Q pre-scaled by 1/sqrt(hs)
         to_heads(params["wk"]),
         to_heads(params["wv"])], axis=0).astype(jnp.bfloat16)   # (3H, C, hs)
    wp_h = params["wp"].reshape(n_head, hs, C).astype(jnp.bfloat16)
    w1 = params["w1"].astype(jnp.bfloat16)                       # (C, 4C)
    w2 = params["w2"].astype(jnp.bfloat16)                       # (4C, C)
    lnb = jnp.concatenate([params["ln1_g"], params["ln1_b"],
                           params["ln2_g"], params["ln2_b"],
                           params["bp"], params["b2"]],
                          axis=0).astype(jnp.float32)            # (6, C)
    b1 = params["b1"].astype(jnp.float32)                        # (1, 4C)

    kernel = _make_block_kernel(B, T, C, n_head)

    def full(shape):
        return pl.BlockSpec(shape, lambda i, _s=shape: (0,) * len(_s))

    out = pl.pallas_call(
        kernel,
        out_shape=jax.ShapeDtypeStruct((BT, C), x.dtype),
        grid=(1,),                                 # single step: all resident
        in_specs=[
            full((BT, C)),                         # x (flattened rows), f32
            full((6, C)),                          # [ln1_g,ln1_b,ln2_g,ln2_b,bp,b2]
            full((3 * n_head, C, hs)),             # head-batched Wqkv (bf16)
            full((n_head, hs, C)),                 # head-batched Wproj (bf16)
            full((1, 4 * C)),                      # b1
            full((C, 4 * C)),                      # W1 (bf16)
            full((4 * C, C)),                      # W2 (bf16)
        ],
        out_specs=full((BT, C)),
        compiler_params=pltpu.CompilerParams(
            dimension_semantics=("arbitrary",)),
    )(x_flat, lnb, wqkv_h, wp_h, b1, w1, w2)
    return out.reshape(B, T, C)


def init_params(key, C=N_EMBD):
    ks = jax.random.split(key, 8)
    scale = 0.02
    return {
        "ln1_g": jnp.ones((1, C), jnp.float32),
        "ln1_b": jnp.zeros((1, C), jnp.float32),
        # per-head K/Q/V projections (no bias) concatenated along output dim -> (C, C)
        "wk": scale * jax.random.normal(ks[0], (C, C), jnp.float32),
        "wq": scale * jax.random.normal(ks[1], (C, C), jnp.float32),
        "wv": scale * jax.random.normal(ks[2], (C, C), jnp.float32),
        "wp": scale * jax.random.normal(ks[3], (C, C), jnp.float32),
        "bp": scale * jax.random.normal(ks[4], (1, C), jnp.float32),
        "ln2_g": jnp.ones((1, C), jnp.float32),
        "ln2_b": jnp.zeros((1, C), jnp.float32),
        "w1": scale * jax.random.normal(ks[5], (C, 4 * C), jnp.float32),
        "b1": jnp.zeros((1, 4 * C), jnp.float32),
        "w2": scale * jax.random.normal(ks[6], (4 * C, C), jnp.float32),
        "b2": jnp.zeros((1, C), jnp.float32),
    }


def reference_block(x, params):
    """Pure-JAX reference matching the PyTorch module (eval mode)."""
    def ln(v, g, b):
        mu = v.mean(-1, keepdims=True)
        var = ((v - mu) ** 2).mean(-1, keepdims=True)
        return (v - mu) / jnp.sqrt(var + LN_EPS) * g + b

    B, T, C = x.shape
    h = ln(x, params["ln1_g"][0], params["ln1_b"][0])
    q = h @ params["wq"]
    k = h @ params["wk"]
    v = h @ params["wv"]
    mask = jnp.tril(jnp.ones((T, T), bool))
    heads = []
    for hd in range(N_HEAD):
        sl = slice(hd * HEAD_SIZE, (hd + 1) * HEAD_SIZE)
        s = jnp.einsum("btd,bsd->bts", q[..., sl], k[..., sl]) * HEAD_SIZE ** -0.5
        s = jnp.where(mask, s, -jnp.inf)
        p = jax.nn.softmax(s, axis=-1)
        heads.append(jnp.einsum("bts,bsd->btd", p, v[..., sl]))
    attn = jnp.concatenate(heads, axis=-1)
    x = x + attn @ params["wp"] + params["bp"][0]
    h2 = ln(x, params["ln2_g"][0], params["ln2_b"][0])
    ff = jnp.maximum(h2 @ params["w1"] + params["b1"][0], 0.0)
    ff = ff @ params["w2"] + params["b2"][0]
    return x + ff


if __name__ == "__main__":
    key = jax.random.PRNGKey(0)
    kx, kp = jax.random.split(key)
    x = jax.random.normal(kx, (BATCH, SEQ, N_EMBD), jnp.float32)
    params = init_params(kp)

    out = transformer_block(x, params)
    out = jax.block_until_ready(out)
    assert out.shape == (BATCH, SEQ, N_EMBD) and out.dtype == jnp.float32
    assert bool(jnp.all(jnp.isfinite(out)))

    ref = reference_block(x, params)
    assert bool(jnp.allclose(out, ref, rtol=1e-2, atol=1e-2))
    print("KERNEL_OK")
</pallas_src>

<mosaic_0001>
module attributes {stable_mosaic.version = 11 : i64} {
  func.func @block_kernel(%arg0: i32, %arg1: memref<16x32xf32, #tpu.memory_space<vmem>>, %arg2: memref<6x32xf32, #tpu.memory_space<vmem>>, %arg3: memref<12x32x8xbf16, #tpu.memory_space<vmem>>, %arg4: memref<4x8x32xbf16, #tpu.memory_space<vmem>>, %arg5: memref<1x128xf32, #tpu.memory_space<vmem>>, %arg6: memref<32x128xbf16, #tpu.memory_space<vmem>>, %arg7: memref<128x32xbf16, #tpu.memory_space<vmem>>, %arg8: memref<16x32xf32, #tpu.memory_space<vmem>>) attributes {dimension_semantics = [#tpu.dimension_semantics<arbitrary>], iteration_bounds = array<i64: 1>, scalar_prefetch = 0 : i64, scratch_operands = 0 : i64, tpu.core_type = #tpu.core_type<tc>, window_params = [{pipeline_mode = #tpu.pipeline_mode<synchronous>, transform_indices = @transform_0, window_bounds = array<i64: 16, 32>}, {pipeline_mode = #tpu.pipeline_mode<synchronous>, transform_indices = @transform_1, window_bounds = array<i64: 6, 32>}, {pipeline_mode = #tpu.pipeline_mode<synchronous>, transform_indices = @transform_2, window_bounds = array<i64: 12, 32, 8>}, {pipeline_mode = #tpu.pipeline_mode<synchronous>, transform_indices = @transform_3, window_bounds = array<i64: 4, 8, 32>}, {pipeline_mode = #tpu.pipeline_mode<synchronous>, transform_indices = @transform_4, window_bounds = array<i64: 1, 128>}, {pipeline_mode = #tpu.pipeline_mode<synchronous>, transform_indices = @transform_5, window_bounds = array<i64: 32, 128>}, {pipeline_mode = #tpu.pipeline_mode<synchronous>, transform_indices = @transform_6, window_bounds = array<i64: 128, 32>}, {pipeline_mode = #tpu.pipeline_mode<synchronous>, transform_indices = @transform_7, window_bounds = array<i64: 16, 32>}]} {
    %c0 = arith.constant 0 : index
    %c0_0 = arith.constant 0 : index
    %0 = vector.load %arg1[%c0, %c0_0] : memref<16x32xf32, #tpu.memory_space<vmem>>, vector<16x32xf32>
    %c0_1 = arith.constant 0 : index
    %c0_2 = arith.constant 0 : index
    %1 = vector.load %arg2[%c0_1, %c0_2] : memref<6x32xf32, #tpu.memory_space<vmem>>, vector<1x32xf32>
    %c1 = arith.constant 1 : index
    %c0_3 = arith.constant 0 : index
    %2 = vector.load %arg2[%c1, %c0_3] : memref<6x32xf32, #tpu.memory_space<vmem>>, vector<1x32xf32>
    %c2 = arith.constant 2 : index
    %c0_4 = arith.constant 0 : index
    %3 = vector.load %arg2[%c2, %c0_4] : memref<6x32xf32, #tpu.memory_space<vmem>>, vector<1x32xf32>
    %c3 = arith.constant 3 : index
    %c0_5 = arith.constant 0 : index
    %4 = vector.load %arg2[%c3, %c0_5] : memref<6x32xf32, #tpu.memory_space<vmem>>, vector<1x32xf32>
    %c4 = arith.constant 4 : index
    %c0_6 = arith.constant 0 : index
    %5 = vector.load %arg2[%c4, %c0_6] : memref<6x32xf32, #tpu.memory_space<vmem>>, vector<1x32xf32>
    %c5 = arith.constant 5 : index
    %c0_7 = arith.constant 0 : index
    %6 = vector.load %arg2[%c5, %c0_7] : memref<6x32xf32, #tpu.memory_space<vmem>>, vector<1x32xf32>
    %cst = arith.constant dense<0.000000e+00> : vector<16xf32>
    %7 = vector.multi_reduction <add>, %0, %cst [1] : vector<16x32xf32> to vector<16xf32>
    %8 = vector.shape_cast %7 : vector<16xf32> to vector<16x1xf32>
    %cst_8 = arith.constant 3.200000e+01 : f32
    %9 = vector.broadcast %cst_8 : f32 to vector<16x1xf32>
    %10 = arith.divf %8, %9 : vector<16x1xf32>
    %11 = vector.broadcast %10 : vector<16x1xf32> to vector<16x32xf32>
    %12 = arith.subf %0, %11 : vector<16x32xf32>
    %13 = arith.mulf %12, %12 : vector<16x32xf32>
    %cst_9 = arith.constant dense<0.000000e+00> : vector<16xf32>
    %14 = vector.multi_reduction <add>, %13, %cst_9 [1] : vector<16x32xf32> to vector<16xf32>
    %15 = vector.shape_cast %14 : vector<16xf32> to vector<16x1xf32>
    %cst_10 = arith.constant 3.200000e+01 : f32
    %16 = vector.broadcast %cst_10 : f32 to vector<16x1xf32>
    %17 = arith.divf %15, %16 : vector<16x1xf32>
    %18 = vector.broadcast %10 : vector<16x1xf32> to vector<16x32xf32>
    %19 = arith.subf %0, %18 : vector<16x32xf32>
    %cst_11 = arith.constant 9.99999974E-6 : f32
    %20 = vector.broadcast %cst_11 : f32 to vector<16x1xf32>
    %21 = arith.addf %17, %20 : vector<16x1xf32>
    %22 = math.rsqrt %21 : vector<16x1xf32>
    %23 = vector.broadcast %22 : vector<16x1xf32> to vector<16x32xf32>
    %24 = arith.mulf %19, %23 : vector<16x32xf32>
    %25 = vector.broadcast %1 : vector<1x32xf32> to vector<16x32xf32>
    %26 = arith.mulf %24, %25 : vector<16x32xf32>
    %27 = vector.broadcast %2 : vector<1x32xf32> to vector<16x32xf32>
    %28 = arith.addf %26, %27 : vector<16x32xf32>
    %29 = arith.truncf %28 : vector<16x32xf32> to vector<16x32xbf16>
    %30 = vector.shape_cast %29 : vector<16x32xbf16> to vector<1x16x32xbf16>
    %31 = vector.shape_cast %30 : vector<1x16x32xbf16> to vector<1x16x32xbf16>
    %32 = vector.broadcast %31 : vector<1x16x32xbf16> to vector<12x16x32xbf16>
    %c0_12 = arith.constant 0 : index
    %c0_13 = arith.constant 0 : index
    %c0_14 = arith.constant 0 : index
    %33 = vector.load %arg3[%c0_12, %c0_13, %c0_14] : memref<12x32x8xbf16, #tpu.memory_space<vmem>>, vector<12x32x8xbf16>
    "tpu.trace_start"() <{level = 10 : i32, message = "hnc,hcd->hnd"}> : () -> ()
    %cst_15 = arith.constant dense<0.000000e+00> : vector<12x16x8xf32>
    %34 = tpu.matmul %32, %33, %cst_15 {dimension_numbers = #tpu.dot_dimension_numbers<[2], [1], [1], [2], [0, 0, 0, 1, 1, 2], [0], [0]>} : vector<12x16x32xbf16>, vector<12x32x8xbf16>, vector<12x16x8xf32> -> vector<12x16x8xf32>
    "tpu.trace_stop"() : () -> ()
    %35 = vector.extract_strided_slice %34 {offsets = [0, 0, 0], sizes = [4, 16, 8], strides = [1, 1, 1]} : vector<12x16x8xf32> to vector<4x16x8xf32>
    %36 = vector.shape_cast %35 : vector<4x16x8xf32> to vector<8x8x8xf32>
    %37 = vector.extract_strided_slice %34 {offsets = [4, 0, 0], sizes = [4, 16, 8], strides = [1, 1, 1]} : vector<12x16x8xf32> to vector<4x16x8xf32>
    %38 = vector.shape_cast %37 : vector<4x16x8xf32> to vector<8x8x8xf32>
    %39 = vector.extract_strided_slice %34 {offsets = [8, 0, 0], sizes = [4, 16, 8], strides = [1, 1, 1]} : vector<12x16x8xf32> to vector<4x16x8xf32>
    %40 = vector.shape_cast %39 : vector<4x16x8xf32> to vector<8x8x8xf32>
    %41 = arith.truncf %36 : vector<8x8x8xf32> to vector<8x8x8xbf16>
    %42 = arith.truncf %38 : vector<8x8x8xf32> to vector<8x8x8xbf16>
    "tpu.trace_start"() <{level = 10 : i32, message = "bqd,bkd->bqk"}> : () -> ()
    %cst_16 = arith.constant dense<0.000000e+00> : vector<8x8x8xf32>
    %43 = tpu.matmul %41, %42, %cst_16 {dimension_numbers = #tpu.dot_dimension_numbers<[2], [2], [1], [1], [0, 0, 0, 1, 1, 1], [0], [0]>} : vector<8x8x8xbf16>, vector<8x8x8xbf16>, vector<8x8x8xf32> -> vector<8x8x8xf32>
    "tpu.trace_stop"() : () -> ()
    %44 = tpu.iota {dimensions = array<i32: 1>} : vector<8x8x8xi32>
    %45 = tpu.iota {dimensions = array<i32: 2>} : vector<8x8x8xi32>
    %46 = arith.cmpi sle, %45, %44 : vector<8x8x8xi32>
    %cst_17 = arith.constant -1.000000e+30 : f32
    %47 = vector.broadcast %cst_17 : f32 to vector<8x8x8xf32>
    %48 = arith.select %46, %43, %47 : vector<8x8x8xi1>, vector<8x8x8xf32>
    %cst_18 = arith.constant dense<0xFF800000> : vector<8x8xf32>
    %49 = vector.multi_reduction <maximumf>, %48, %cst_18 [2] : vector<8x8x8xf32> to vector<8x8xf32>
    %50 = vector.shape_cast %49 : vector<8x8xf32> to vector<8x8x1xf32>
    %51 = vector.broadcast %50 : vector<8x8x1xf32> to vector<8x8x8xf32>
    %52 = arith.subf %48, %51 : vector<8x8x8xf32>
    %53 = math.exp %52 : vector<8x8x8xf32>
    %cst_19 = arith.constant dense<0.000000e+00> : vector<8x8xf32>
    %54 = vector.multi_reduction <add>, %53, %cst_19 [2] : vector<8x8x8xf32> to vector<8x8xf32>
    %55 = vector.shape_cast %54 : vector<8x8xf32> to vector<8x8x1xf32>
    %56 = tpu.reciprocal %55 {approx = true} : vector<8x8x1xf32> -> vector<8x8x1xf32>
    %57 = vector.broadcast %56 : vector<8x8x1xf32> to vector<8x8x8xf32>
    %58 = arith.mulf %53, %57 : vector<8x8x8xf32>
    %59 = arith.truncf %58 : vector<8x8x8xf32> to vector<8x8x8xbf16>
    %60 = arith.truncf %40 : vector<8x8x8xf32> to vector<8x8x8xbf16>
    "tpu.trace_start"() <{level = 10 : i32, message = "bqk,bkd->bqd"}> : () -> ()
    %cst_20 = arith.constant dense<0.000000e+00> : vector<8x8x8xf32>
    %61 = tpu.matmul %59, %60, %cst_20 {dimension_numbers = #tpu.dot_dimension_numbers<[2], [1], [1], [2], [0, 0, 0, 1, 1, 2], [0], [0]>} : vector<8x8x8xbf16>, vector<8x8x8xbf16>, vector<8x8x8xf32> -> vector<8x8x8xf32>
    "tpu.trace_stop"() : () -> ()
    %62 = vector.shape_cast %61 : vector<8x8x8xf32> to vector<4x16x8xf32>
    %63 = arith.truncf %62 : vector<4x16x8xf32> to vector<4x16x8xbf16>
    %c0_21 = arith.constant 0 : index
    %c0_22 = arith.constant 0 : index
    %c0_23 = arith.constant 0 : index
    %64 = vector.load %arg4[%c0_21, %c0_22, %c0_23] : memref<4x8x32xbf16, #tpu.memory_space<vmem>>, vector<4x8x32xbf16>
    "tpu.trace_start"() <{level = 10 : i32, message = "hnd,hdc->hnc"}> : () -> ()
    %cst_24 = arith.constant dense<0.000000e+00> : vector<4x16x32xf32>
    %65 = tpu.matmul %63, %64, %cst_24 {dimension_numbers = #tpu.dot_dimension_numbers<[2], [1], [1], [2], [0, 0, 0, 1, 1, 2], [0], [0]>} : vector<4x16x8xbf16>, vector<4x8x32xbf16>, vector<4x16x32xf32> -> vector<4x16x32xf32>
    "tpu.trace_stop"() : () -> ()
    %cst_25 = arith.constant dense<0.000000e+00> : vector<16x32xf32>
    %66 = vector.multi_reduction <add>, %65, %cst_25 [0] : vector<4x16x32xf32> to vector<16x32xf32>
    %67 = vector.broadcast %5 : vector<1x32xf32> to vector<16x32xf32>
    %68 = arith.addf %66, %67 : vector<16x32xf32>
    %69 = arith.addf %0, %68 : vector<16x32xf32>
    %cst_26 = arith.constant dense<0.000000e+00> : vector<16xf32>
    %70 = vector.multi_reduction <add>, %69, %cst_26 [1] : vector<16x32xf32> to vector<16xf32>
    %71 = vector.shape_cast %70 : vector<16xf32> to vector<16x1xf32>
    %cst_27 = arith.constant 3.200000e+01 : f32
    %72 = vector.broadcast %cst_27 : f32 to vector<16x1xf32>
    %73 = arith.divf %71, %72 : vector<16x1xf32>
    %74 = vector.broadcast %73 : vector<16x1xf32> to vector<16x32xf32>
    %75 = arith.subf %69, %74 : vector<16x32xf32>
    %76 = arith.mulf %75, %75 : vector<16x32xf32>
    %cst_28 = arith.constant dense<0.000000e+00> : vector<16xf32>
    %77 = vector.multi_reduction <add>, %76, %cst_28 [1] : vector<16x32xf32> to vector<16xf32>
    %78 = vector.shape_cast %77 : vector<16xf32> to vector<16x1xf32>
    %cst_29 = arith.constant 3.200000e+01 : f32
    %79 = vector.broadcast %cst_29 : f32 to vector<16x1xf32>
    %80 = arith.divf %78, %79 : vector<16x1xf32>
    %81 = vector.broadcast %73 : vector<16x1xf32> to vector<16x32xf32>
    %82 = arith.subf %69, %81 : vector<16x32xf32>
    %cst_30 = arith.constant 9.99999974E-6 : f32
    %83 = vector.broadcast %cst_30 : f32 to vector<16x1xf32>
    %84 = arith.addf %80, %83 : vector<16x1xf32>
    %85 = math.rsqrt %84 : vector<16x1xf32>
    %86 = vector.broadcast %85 : vector<16x1xf32> to vector<16x32xf32>
    %87 = arith.mulf %82, %86 : vector<16x32xf32>
    %88 = vector.broadcast %3 : vector<1x32xf32> to vector<16x32xf32>
    %89 = arith.mulf %87, %88 : vector<16x32xf32>
    %90 = vector.broadcast %4 : vector<1x32xf32> to vector<16x32xf32>
    %91 = arith.addf %89, %90 : vector<16x32xf32>
    %92 = arith.truncf %91 : vector<16x32xf32> to vector<16x32xbf16>
    %c0_31 = arith.constant 0 : index
    %c0_32 = arith.constant 0 : index
    %93 = vector.load %arg6[%c0_31, %c0_32] : memref<32x128xbf16, #tpu.memory_space<vmem>>, vector<32x128xbf16>
    %cst_33 = arith.constant dense<0.000000e+00> : vector<16x128xf32>
    %94 = tpu.matmul %92, %93, %cst_33 {dimension_numbers = #tpu.dot_dimension_numbers<[1], [0], [0], [1], [0, 0, 1, 1], [], []>} : vector<16x32xbf16>, vector<32x128xbf16>, vector<16x128xf32> -> vector<16x128xf32>
    %c0_34 = arith.constant 0 : index
    %c0_35 = arith.constant 0 : index
    %95 = vector.load %arg5[%c0_34, %c0_35] : memref<1x128xf32, #tpu.memory_space<vmem>>, vector<1x128xf32>
    %96 = vector.broadcast %95 : vector<1x128xf32> to vector<16x128xf32>
    %97 = arith.addf %94, %96 : vector<16x128xf32>
    %cst_36 = arith.constant 0.000000e+00 : f32
    %98 = vector.broadcast %cst_36 : f32 to vector<16x128xf32>
    %99 = arith.maximumf %97, %98 : vector<16x128xf32>
    %100 = arith.truncf %99 : vector<16x128xf32> to vector<16x128xbf16>
    %c0_37 = arith.constant 0 : index
    %c0_38 = arith.constant 0 : index
    %101 = vector.load %arg7[%c0_37, %c0_38] : memref<128x32xbf16, #tpu.memory_space<vmem>>, vector<128x32xbf16>
    %cst_39 = arith.constant dense<0.000000e+00> : vector<16x32xf32>
    %102 = tpu.matmul %100, %101, %cst_39 {dimension_numbers = #tpu.dot_dimension_numbers<[1], [0], [0], [1], [0, 0, 1, 1], [], []>} : vector<16x128xbf16>, vector<128x32xbf16>, vector<16x32xf32> -> vector<16x32xf32>
    %103 = vector.broadcast %6 : vector<1x32xf32> to vector<16x32xf32>
    %104 = arith.addf %102, %103 : vector<16x32xf32>
    %105 = arith.addf %69, %104 : vector<16x32xf32>
    %c0_40 = arith.constant 0 : index
    %c0_41 = arith.constant 0 : index
    %106 = vector.load %arg8[%c0_40, %c0_41] : memref<16x32xf32, #tpu.memory_space<vmem>>, vector<16x32xf32>
    tpu.vector_store %arg8[%c0_40, %c0_41], %105 {strides = array<i32>} : memref<16x32xf32, #tpu.memory_space<vmem>>, vector<16x32xf32>,
    return
  }
  func.func @transform_0(%arg0: i32) -> (i32, i32) {
    %c0_i32 = arith.constant 0 : i32
    %c0_i32_0 = arith.constant 0 : i32
    %c0_i32_1 = arith.constant 0 : i32
    return %c0_i32, %c0_i32_0 : i32, i32
  }
  func.func @transform_1(%arg0: i32) -> (i32, i32) {
    %c0_i32 = arith.constant 0 : i32
    %c0_i32_0 = arith.constant 0 : i32
    %c0_i32_1 = arith.constant 0 : i32
    return %c0_i32, %c0_i32_0 : i32, i32
  }
  func.func @transform_2(%arg0: i32) -> (i32, i32, i32) {
    %c0_i32 = arith.constant 0 : i32
    %c0_i32_0 = arith.constant 0 : i32
    %c0_i32_1 = arith.constant 0 : i32
    %c0_i32_2 = arith.constant 0 : i32
    return %c0_i32, %c0_i32_0, %c0_i32_1 : i32, i32, i32
  }
  func.func @transform_3(%arg0: i32) -> (i32, i32, i32) {
    %c0_i32 = arith.constant 0 : i32
    %c0_i32_0 = arith.constant 0 : i32
    %c0_i32_1 = arith.constant 0 : i32
    %c0_i32_2 = arith.constant 0 : i32
    return %c0_i32, %c0_i32_0, %c0_i32_1 : i32, i32, i32
  }
  func.func @transform_4(%arg0: i32) -> (i32, i32) {
    %c0_i32 = arith.constant 0 : i32
    %c0_i32_0 = arith.constant 0 : i32
    %c0_i32_1 = arith.constant 0 : i32
    return %c0_i32, %c0_i32_0 : i32, i32
  }
  func.func @transform_5(%arg0: i32) -> (i32, i32) {
    %c0_i32 = arith.constant 0 : i32
    %c0_i32_0 = arith.constant 0 : i32
    %c0_i32_1 = arith.constant 0 : i32
    return %c0_i32, %c0_i32_0 : i32, i32
  }
  func.func @transform_6(%arg0: i32) -> (i32, i32) {
    %c0_i32 = arith.constant 0 : i32
    %c0_i32_0 = arith.constant 0 : i32
    %c0_i32_1 = arith.constant 0 : i32
    return %c0_i32, %c0_i32_0 : i32, i32
  }
  func.func @transform_7(%arg0: i32) -> (i32, i32) {
    %c0_i32 = arith.constant 0 : i32
    %c0_i32_0 = arith.constant 0 : i32
    %c0_i32_1 = arith.constant 0 : i32
    return %c0_i32, %c0_i32_0 : i32, i32
  }
}

</mosaic_0001>

<bundles_post_ra>
// kernel: tpu_custom_call.1
= control target key start
LH: loop header
LB: loop body
LE: loop exit
PB: predicated region body
PF: predicated region fallthrough
CT: control target
= control target key end

     0   :  { %vm36_vm0 = vcmask 261120   ;;  %s3116_s0 = inlined_call_operand.vmem [shape: f32[16,32], index: 0, kind: input, shape index: {}]   ;;  %s3117_s1 = inlined_call_operand.vmem [shape: f32[6,32], index: 1, kind: input, shape index: {}]   ;;  %s3118_s2 = inlined_call_operand.vmem [shape: bf16[12,32,8], index: 2, kind: input, shape index: {}]   ;;  %s3119_s3 = inlined_call_operand.vmem [shape: bf16[4,8,32], index: 3, kind: input, shape index: {}]   ;;  %s3120_s4 = inlined_call_operand.vmem [shape: f32[1,128], index: 4, kind: input, shape index: {}]   ;;  %s3121_s5 = inlined_call_operand.vmem [shape: bf16[32,128], index: 5, kind: input, shape index: {}]   ;;  %s3122_s6 = inlined_call_operand.vmem [shape: bf16[128,32], index: 6, kind: input, shape index: {}]   ;;  %s3123_s7 = inlined_call_operand.hbm [shape: f32[16,32], index: 7, kind: output, shape index: {}]  }
   0x1   :  { %v28_v0 = vld [vmem:[%s3116_s0] sm:$0xff]  ;;  %v29_v1 = vld [vmem:[%s3116_s0 + $0x8] sm:$0xff] }
   0x2   :  { %v37_v2 = vsel %vm36_vm0, %v28_v0, 0.0  ;;  %v40_v3 = vsel %vm36_vm0, %v29_v1, 0.0 }
   0x3   :  { %38 = vadd.xlane.f32.xlu0 %v37_v2 }
   0x7   :  { %41 = vadd.xlane.f32.xlu0 %v40_v3 }
   0x8   :  { %12 = vsyncpa [#allocation3], 0  ;;  %v2502_v14 = vld [vmem:[%s3118_s2 + $0x8] sm:$0xff]   ;;  %v2503_v15 = vld [vmem:[%s3118_s2 + $0x38] sm:$0xff]   ;;  %v2600_v16 = vmov 0.0   ;;  %vm2601_vm1 = vmmov 0  }
   0x9   :  { %2253 = vmatprep.subr.bf16.mxu0 %v2600_v16  ;;  %2277 = vmatprep.subr.bf16.mxu1 %v2600_v16  ;;  %v2504_v17 = vld [vmem:[%s3118_s2] sm:$0xff]   ;;  %v2505_v18 = vld [vmem:[%s3118_s2 + $0x30] sm:$0xff]   ;;  %v2506_v35 = vld [vmem:[%s3118_s2 + $0x18] sm:$0xff]   ;;  %vm780_vm2 = vcmask 64512   ;;  %vm1269_vm3 = vcmask 1043456  }
   0xa   :  { %2254 = vmatpush3.bf16.msra.mxu0 %v2502_v14  ;;  %2278 = vmatpush3.bf16.msra.mxu1 %v2503_v15  ;;  %v2091_v27 = vld [vmem:[%s3117_s1] ss:$0 sm:$0xff]  ;;  %v2092_v31 = vld [vmem:[%s3117_s1 + $0x1] ss:$0 sm:$0xff]  ;;  %v2507_v36 = vld [vmem:[%s3118_s2 + $0x58] sm:$0xff]  }
   0xb   :  { %2255 = vmatprep.subr.bf16.mxu0 %v2600_v16  ;;  %2279 = vmatprep.subr.bf16.mxu1 %v2600_v16  ;;  %v2508_v38 = vld [vmem:[%s3118_s2 + $0x10] sm:$0xff]   ;;  %v2510_v40 = vld [vmem:[%s3118_s2 + $0x28] sm:$0xff]   ;;  %v2511_v41 = vld [vmem:[%s3118_s2 + $0x78] sm:$0xff]  }
   0xc   :  { %2257 = vmatprep.mubr.msk.bf16.mxu0 %vm2601_vm1, %v2600_v16  ;;  %2281 = vmatprep.mubr.msk.bf16.mxu1 %vm2601_vm1, %v2600_v16  ;;  %v2509_v39 = vld [vmem:[%s3118_s2 + $0x50] sm:$0xff]   ;;  %v2512_v42 = vld [vmem:[%s3118_s2 + $0x20] sm:$0xff]   ;;  %v2514_v44 = vld [vmem:[%s3118_s2 + $0x48] sm:$0xff]  }
   0xd   :  { %v2513_v43 = vld [vmem:[%s3118_s2 + $0x70] sm:$0xff]   ;;  %v2515_v45 = vld [vmem:[%s3118_s2 + $0x98] sm:$0xff]   ;;  %v2516_v46 = vld [vmem:[%s3118_s2 + $0x40] sm:$0xff]  }
   0xe   :  { %2256 = vmatpush3.bf16.msra.mxu0 %v2504_v17  ;;  %2280 = vmatpush3.bf16.msra.mxu1 %v2505_v18  ;;  %v2517_v47 = vld [vmem:[%s3118_s2 + $0x90] sm:$0xff]   ;;  %v2518_v48 = vld [vmem:[%s3118_s2 + $0x68] sm:$0xff]   ;;  %v2519_v49 = vld [vmem:[%s3118_s2 + $0xb8] sm:$0xff]  }
   0xf   :  { %2261 = vmatprep.subr.bf16.mxu0 %v2600_v16  ;;  %2293 = vmatprep.subr.bf16.mxu1 %v2600_v16  ;;  %v2520_v50 = vld [vmem:[%s3118_s2 + $0x60] sm:$0xff]   ;;  %v2521_v51 = vld [vmem:[%s3118_s2 + $0xb0] sm:$0xff]   ;;  %v2522_v52 = vld [vmem:[%s3118_s2 + $0x88] sm:$0xff]  }
  0x10   :  { %v2523_v53 = vld [vmem:[%s3118_s2 + $0x80] sm:$0xff]   ;;  %v2524_v54 = vld [vmem:[%s3118_s2 + $0xa8] sm:$0xff]  }
  0x11   :  { %v2525_v55 = vld [vmem:[%s3118_s2 + $0xa0] sm:$0xff]  }
  0x8c   :  { %v39_v4 = vpop.xlane.xlu0 %38 }
  0x8d   :  { %v44_v5 = vmul.f32 0.03125, %v39_v4 }
  0x8f   :  { %v46_v6 = vsub.f32 %v28_v0, %v44_v5 }
  0x90   :  { %v42_v7 = vpop.xlane.xlu0 %41 }
  0x91   :  { %v45_v8 = vmul.f32 0.03125, %v42_v7  ;;  %v48_v9 = vmul.f32 %v46_v6, %v46_v6 }
  0x93   :  { %v47_v10 = vsub.f32 %v29_v1, %v45_v8  ;;  %v50_v11 = vsel %vm36_vm0, %v48_v9, 0.0 }
  0x94   :  { %51 = vadd.xlane.f32.xlu1 %v50_v11 }
  0x95   :  { %v49_v12 = vmul.f32 %v47_v10, %v47_v10 }
  0x97   :  { %v53_v13 = vsel %vm36_vm0, %v49_v12, 0.0 }
  0x98   :  { %54 = vadd.xlane.f32.xlu1 %v53_v13 }
 0x11d   :  { %v52_v19 = vpop.xlane.xlu1 %51 }
 0x11e   :  { %v56_v20 = vmul.f32 0.03125, %v52_v19 }
 0x120   :  { %v58_v21 = vadd.f32 1e-05, %v56_v20 }
 0x121   :  { %v55_v22 = vpop.xlane.xlu1 %54 }
 0x122   :  { %2536 = vrsqrt.f32 %v58_v21  ;;  %v57_v23 = vmul.f32 0.03125, %v55_v22 }
 0x124   :  { %v59_v24 = vadd.f32 1e-05, %v57_v23 }
 0x126   :  { %2538 = vrsqrt.f32 %v59_v24 }
 0x12f   :  { %v2537_v25 = vpop.eup %2536 }
 0x130   :  { %v62_v26 = vmul.f32 %v2537_v25, %v46_v6 }
 0x132   :  { %v68_v29 = vmul.f32 %v2091_v27, %v62_v26 }
 0x133   :  { %v2539_v28 = vpop.eup %2538 }
 0x134   :  { %v63_v30 = vmul.f32 %v2539_v28, %v47_v10  ;;  %v74_v33 = vadd.f32 %v2092_v31, %v68_v29 }
 0x136   :  { %v69_v32 = vmul.f32 %v2091_v27, %v63_v30 }
 0x138   :  { %v75_v34 = vadd.f32 %v2092_v31, %v69_v32 }
 0x13a   :  { %v2689_v37 = vpack.c.bf16 %v75_v34, %v74_v33 }
 0x13c   :  { %2258 = vmatmul.mubr.msk.bf16.vlgmr.msra.gmra.mxu0 %vm36_vm0, %v2689_v37  ;;  %2282 = vmatmul.mubr.msk.bf16.vlgmr.msra.gmra.mxu1 %vm36_vm0, %v2689_v37 }
 0x13d   :  { %2262 = vmatpush3.bf16.msra.mxu0 %v2506_v35  ;;  %2294 = vmatpush3.bf16.msra.mxu1 %v2507_v36 }
 0x13e   :  { %2263 = vmatprep.subr.bf16.mxu0 %v2600_v16  ;;  %2295 = vmatprep.subr.bf16.mxu1 %v2600_v16 }
 0x13f   :  { %2265 = vmatprep.mubr.msk.bf16.mxu0 %vm2601_vm1, %v2600_v16  ;;  %2297 = vmatprep.mubr.msk.bf16.mxu1 %vm2601_vm1, %v2600_v16 }
 0x141   :  { %2264 = vmatpush3.bf16.msra.mxu0 %v2508_v38  ;;  %2296 = vmatpush3.bf16.msra.mxu1 %v2509_v39 }
 0x142   :  { %2269 = vmatprep.subr.bf16.mxu0 %v2600_v16  ;;  %2309 = vmatprep.subr.bf16.mxu1 %v2600_v16 }
 0x144   :  { %2266 = vmatmul.mubr.msk.bf16.vlgmr.msra.gmra.mxu0 %vm36_vm0, %v2689_v37  ;;  %2298 = vmatmul.mubr.msk.bf16.vlgmr.msra.gmra.mxu1 %vm36_vm0, %v2689_v37 }
 0x145   :  { %2270 = vmatpush3.bf16.msra.mxu0 %v2510_v40  ;;  %2310 = vmatpush3.bf16.msra.mxu1 %v2511_v41 }
 0x146   :  { %2271 = vmatprep.subr.bf16.mxu0 %v2600_v16  ;;  %2311 = vmatprep.subr.bf16.mxu1 %v2600_v16 }
 0x147   :  { %2273 = vmatprep.mubr.msk.bf16.mxu0 %vm2601_vm1, %v2600_v16  ;;  %2313 = vmatprep.mubr.msk.bf16.mxu1 %vm2601_vm1, %v2600_v16 }
 0x149   :  { %2272 = vmatpush3.bf16.msra.mxu0 %v2512_v42  ;;  %2312 = vmatpush3.bf16.msra.mxu1 %v2513_v43 }
 0x14a   :  { %2285 = vmatprep.subr.bf16.mxu0 %v2600_v16  ;;  %2325 = vmatprep.subr.bf16.mxu1 %v2600_v16 }
 0x14c   :  { %2274 = vmatmul.mubr.msk.bf16.vlgmr.msra.gmra.mxu0 %vm36_vm0, %v2689_v37  ;;  %2314 = vmatmul.mubr.msk.bf16.vlgmr.msra.gmra.mxu1 %vm36_vm0, %v2689_v37 }
 0x14d   :  { %2286 = vmatpush3.bf16.msra.mxu0 %v2514_v44  ;;  %2326 = vmatpush3.bf16.msra.mxu1 %v2515_v45 }
 0x14e   :  { %2287 = vmatprep.subr.bf16.mxu0 %v2600_v16  ;;  %2327 = vmatprep.subr.bf16.mxu1 %v2600_v16 }
 0x14f   :  { %2289 = vmatprep.mubr.msk.bf16.mxu0 %vm2601_vm1, %v2600_v16  ;;  %2329 = vmatprep.mubr.msk.bf16.mxu1 %vm2601_vm1, %v2600_v16 }
 0x151   :  { %2288 = vmatpush3.bf16.msra.mxu0 %v2516_v46  ;;  %2328 = vmatpush3.bf16.msra.mxu1 %v2517_v47 }
 0x152   :  { %2301 = vmatprep.subr.bf16.mxu0 %v2600_v16  ;;  %2341 = vmatprep.subr.bf16.mxu1 %v2600_v16 }
 0x154   :  { %2290 = vmatmul.mubr.msk.bf16.vlgmr.msra.gmra.mxu0 %vm36_vm0, %v2689_v37  ;;  %2330 = vmatmul.mubr.msk.bf16.vlgmr.msra.gmra.mxu1 %vm36_vm0, %v2689_v37 }
 0x155   :  { %2302 = vmatpush3.bf16.msra.mxu0 %v2518_v48  ;;  %2342 = vmatpush3.bf16.msra.mxu1 %v2519_v49 }
 0x156   :  { %2303 = vmatprep.subr.bf16.mxu0 %v2600_v16  ;;  %2343 = vmatprep.subr.bf16.mxu1 %v2600_v16 }
 0x157   :  { %2305 = vmatprep.mubr.msk.bf16.mxu0 %vm2601_vm1, %v2600_v16  ;;  %2345 = vmatprep.mubr.msk.bf16.mxu1 %vm2601_vm1, %v2600_v16 }
 0x159   :  { %2304 = vmatpush3.bf16.msra.mxu0 %v2520_v50  ;;  %2344 = vmatpush3.bf16.msra.mxu1 %v2521_v51 }
 0x15a   :  { %2317 = vmatprep.subr.bf16.mxu0 %v2600_v16  ;;  %2355 = vmatprep.subr.bf16.mxu1 %v2600_v16 }
 0x15c   :  { %2306 = vmatmul.mubr.msk.bf16.vlgmr.msra.gmra.mxu0 %vm36_vm0, %v2689_v37  ;;  %2346 = vmatmul.mubr.msk.bf16.vlgmr.msra.gmra.mxu1 %vm36_vm0, %v2689_v37 }
 0x15d   :  { %2318 = vmatpush3.bf16.msra.mxu0 %v2522_v52  ;;  %2321 = vmatprep.mubr.msk.bf16.mxu0 %vm2601_vm1, %v2600_v16 }
 0x15e   :  { %2319 = vmatprep.subr.bf16.mxu0 %v2600_v16  ;;  %2357 = vmatprep.mubr.msk.bf16.mxu1 %vm2601_vm1, %v2600_v16 }
 0x161   :  { %2320 = vmatpush3.bf16.msra.mxu0 %v2523_v53 }
 0x162   :  { %2333 = vmatprep.subr.bf16.mxu0 %v2600_v16 }
 0x164   :  { %2322 = vmatmul.mubr.msk.bf16.vlgmr.msra.gmra.mxu0 %vm36_vm0, %v2689_v37 }
 0x165   :  { %2334 = vmatpush3.bf16.msra.mxu0 %v2524_v54  ;;  %2337 = vmatprep.mubr.msk.bf16.mxu0 %vm2601_vm1, %v2600_v16 }
 0x166   :  { %2335 = vmatprep.subr.bf16.mxu0 %v2600_v16 }
 0x169   :  { %2336 = vmatpush3.bf16.msra.mxu0 %v2525_v55 }
 0x16a   :  { %2349 = vmatprep.subr.bf16.mxu0 %v2600_v16 }
 0x16c   :  { %2338 = vmatmul.mubr.msk.bf16.vlgmr.msra.gmra.mxu0 %vm36_vm0, %v2689_v37 }
 0x16d   :  { %2351 = vmatprep.mubr.msk.bf16.mxu0 %vm2601_vm1, %v2600_v16 }
 0x1fc   :  { %v174_v56 = vpop.f32.mrf.mxu0  ;;  %v2813_v57 = vpop.f32.mrf.mxu1 }
 0x1fd   :  { %v764_v32 = vpack.c.bf16 %v174_v56, %v174_v56 }
 0x1fe   :  { %v2259_v58 = vpop.f32.mrf.mxu0  ;;  %v2283_v59 = vpop.f32.mrf.mxu1 }
 0x200   :  { %v177_v60 = vpop.f32.mrf.mxu0  ;;  %v2815_v61 = vpop.f32.mrf.mxu1 }
 0x201   :  { %v765_v39 = vpack.c.bf16 %v177_v60, %v177_v60 }
 0x202   :  { %v2260_v62 = vpop.f32.mrf.mxu0  ;;  %v2284_v63 = vpop.f32.mrf.mxu1 }
 0x204   :  { %v227_v0 = vpop.f32.mrf.mxu0  ;;  %v439_v1 = vpop.f32.mrf.mxu1 }
 0x205   :  { %v774_v28 = vpack.c.bf16 %v439_v1, %v439_v1  ;;  %v766_v45 = vpack.c.bf16 %v227_v0, %v227_v0 }
 0x206   :  { %v2267_v2 = vpop.f32.mrf.mxu0  ;;  %v2299_v3 = vpop.f32.mrf.mxu1 }
 0x207   :  { %v877_v35 = vsel %vm780_vm2, %v774_v28, 0  ;;  %v770_v2 = vpack.c.bf16 %v2813_v57, %v2813_v57  ;;  %v1149_v57 = vlaneseq }
 0x208   :  { %v2817_v4 = vpop.f32.mrf.mxu0  ;;  %v442_v5 = vpop.f32.mrf.mxu1 }
 0x209   :  { %v775_v36 = vpack.c.bf16 %v442_v5, %v442_v5  ;;  %v767_v50 = vpack.c.bf16 %v2817_v4, %v2817_v4  ;;  %v771_v5 = vpack.c.bf16 %v2815_v61, %v2815_v61 }
 0x20a   :  { %v2268_v6 = vpop.f32.mrf.mxu0  ;;  %v2300_v7 = vpop.f32.mrf.mxu1 }
 0x20b   :  { %v923_v42 = vsel %vm780_vm2, %v775_v36, 0  ;;  %v1150_v7 = vshrl.u32 %v1149_v57, 7 }
 0x20c   :  { %v2819_v8 = vpop.f32.mrf.mxu0  ;;  %v2821_v9 = vpop.f32.mrf.mxu1 }
 0x20d   :  { %v778_v52 = vpack.c.bf16 %v2821_v9, %v2821_v9  ;;  %v768_v55 = vpack.c.bf16 %v2819_v8, %v2819_v8  ;;  %v1152_v8 = vand.u32 127, %v1149_v57 }
 0x20e   :  { %v2275_v10 = vpop.f32.mrf.mxu0  ;;  %v2315_v11 = vpop.f32.mrf.mxu1 }
 0x20f   :  { %v1061_v58 = vsel %vm780_vm2, %v778_v52, 0  ;;  %vm2897_vm4 = vcmp.le.s32.totalorder %v1152_v8, %v1150_v7 }
 0x210   :  { %v2823_v12 = vpop.f32.mrf.mxu0  ;;  %v2825_v13 = vpop.f32.mrf.mxu1 }
 0x211   :  { %v779_v59 = vpack.c.bf16 %v2825_v13, %v2825_v13  ;;  %v769_v62 = vpack.c.bf16 %v2823_v12, %v2823_v12 }
 0x212   :  { %v2276_v14 = vpop.f32.mrf.mxu0  ;;  %v2316_v15 = vpop.f32.mrf.mxu1 }
 0x213   :  { %v1107_v0 = vsel %vm780_vm2, %v779_v59, 0 }
 0x214   :  { %v386_v17 = vpop.f32.mrf.mxu0  ;;  %v2827_v18 = vpop.f32.mrf.mxu1 }
 0x215   :  { %v772_v19 = vpack.c.bf16 %v386_v17, %v386_v17 }
 0x216   :  { %v2291_v20 = vpop.f32.mrf.mxu0  ;;  %v2331_v21 = vpop.f32.mrf.mxu1 }
 0x217   :  { %v785_v22 = vsel %vm780_vm2, %v772_v19, 0 }
 0x218   :  { %v389_v23 = vpop.f32.mrf.mxu0  ;;  %v2830_v24 = vpop.f32.mrf.mxu1  ;;  %2350 = vmatpush3.bf16.xpose.msra.mxu0 %v785_v22 }
 0x219   :  { %v773_v25 = vpack.c.bf16 %v389_v23, %v389_v23  ;;  %2361 = vmatprep.subr.bf16.mxu0 %v2600_v16 }
 0x21a   :  { %v2292_v26 = vpop.f32.mrf.mxu0  ;;  %v2332_v27 = vpop.f32.mrf.mxu1 }
 0x21b   :  { %v831_v29 = vsel %vm780_vm2, %v773_v25, 0 }
 0x21c   :  { %v492_v30 = vpop.f32.mrf.mxu0  ;;  %v2834_v31 = vpop.f32.mrf.mxu1  ;;  %2356 = vmatpush3.bf16.xpose.msra.mxu1 %v831_v29 }
 0x21d   :  { %2367 = vmatprep.subr.bf16.mxu1 %v2600_v16  ;;  %v776_v43 = vpack.c.bf16 %v492_v30, %v492_v30 }
 0x21e   :  { %v2307_v33 = vpop.f32.mrf.mxu0  ;;  %v2347_v34 = vpop.f32.mrf.mxu1 }
 0x21f   :  { %2352 = vmatmul.mubr.msk.bf16.vlgmr.msra.gmra.mxu0 %vm780_vm2, %v764_v32  ;;  %v969_v47 = vsel %vm780_vm2, %v776_v43, 0 }
 0x220   :  { %v495_v37 = vpop.f32.mrf.mxu0  ;;  %v2839_v38 = vpop.f32.mrf.mxu1  ;;  %2362 = vmatpush3.bf16.xpose.msra.mxu0 %v877_v35  ;;  %2363 = vmatprep.mubr.msk.bf16.mxu0 %vm2601_vm1, %v2600_v16 }
 0x221   :  { %2373 = vmatprep.subr.bf16.mxu0 %v2600_v16  ;;  %v777_v48 = vpack.c.bf16 %v495_v37, %v495_v37 }
 0x222   :  { %v2308_v40 = vpop.f32.mrf.mxu0  ;;  %v2348_v41 = vpop.f32.mrf.mxu1 }
 0x223   :  { %2358 = vmatmul.mubr.msk.bf16.vlgmr.msra.gmra.mxu1 %vm780_vm2, %v765_v39  ;;  %v1015_v53 = vsel %vm780_vm2, %v777_v48, 0 }
 0x224   :  { %v598_v44 = vpop.f32.mrf.mxu0  ;;  %2368 = vmatpush3.bf16.xpose.msra.mxu1 %v923_v42  ;;  %2369 = vmatprep.mubr.msk.bf16.mxu1 %vm2601_vm1, %v2600_v16 }
 0x225   :  { %2379 = vmatprep.subr.bf16.mxu1 %v2600_v16  ;;  %v1258_v1 = vpack.c.bf16 %v598_v44, %v598_v44 }
 0x226   :  { %v2323_v46 = vpop.f32.mrf.mxu0 }
 0x227   :  { %2364 = vmatmul.mubr.msk.bf16.vlgmr.msra.gmra.mxu0 %vm780_vm2, %v766_v45  ;;  %v1271_v3 = vsel %vm1269_vm3, %v1258_v1, 0 }
 0x228   :  { %v601_v49 = vpop.f32.mrf.mxu0  ;;  %2374 = vmatpush3.bf16.xpose.msra.mxu0 %v969_v47  ;;  %2375 = vmatprep.mubr.msk.bf16.mxu0 %vm2601_vm1, %v2600_v16 }
 0x229   :  { %2385 = vmatprep.subr.bf16.mxu0 %v2600_v16  ;;  %v1259_v4 = vpack.c.bf16 %v601_v49, %v601_v49 }
 0x22a   :  { %v2324_v51 = vpop.f32.mrf.mxu0 }
 0x22b   :  { %2370 = vmatmul.mubr.msk.bf16.vlgmr.msra.gmra.mxu1 %vm780_vm2, %v767_v50  ;;  %v1317_v6 = vsel %vm1269_vm3, %v1259_v4, 0 }
 0x22c   :  { %v2860_v54 = vpop.f32.mrf.mxu0  ;;  %2380 = vmatpush3.bf16.xpose.msra.mxu1 %v1015_v53  ;;  %2381 = vmatprep.mubr.msk.bf16.mxu1 %vm2601_vm1, %v2600_v16 }
 0x22d   :  { %2391 = vmatprep.subr.bf16.mxu1 %v2600_v16 }
 0x22e   :  { %v2339_v56 = vpop.f32.mrf.mxu0 }
 0x22f   :  { %2376 = vmatmul.mubr.msk.bf16.vlgmr.msra.gmra.mxu0 %vm780_vm2, %v768_v55 }
 0x230   :  { %v2871_v60 = vpop.f32.mrf.mxu0  ;;  %2386 = vmatpush3.bf16.xpose.msra.mxu0 %v1061_v58  ;;  %2387 = vmatprep.mubr.msk.bf16.mxu0 %vm2601_vm1, %v2600_v16 }
 0x231   :  { %2397 = vmatprep.subr.bf16.mxu0 %v2600_v16 }
 0x232   :  { %v2340_v63 = vpop.f32.mrf.mxu0 }
 0x233   :  { %2382 = vmatmul.mubr.msk.bf16.vlgmr.msra.gmra.mxu1 %vm780_vm2, %v769_v62 }
 0x234   :  { %2392 = vmatpush3.bf16.xpose.msra.mxu1 %v1107_v0  ;;  %2393 = vmatprep.mubr.msk.bf16.mxu1 %vm2601_vm1, %v2600_v16 }
 0x235   :  { %2403 = vmatprep.subr.bf16.mxu1 %v2600_v16 }
 0x237   :  { %2388 = vmatmul.mubr.msk.bf16.vlgmr.msra.gmra.mxu0 %vm780_vm2, %v770_v2 }
 0x238   :  { %2398 = vmatpush3.bf16.msra.mxu0 %v1271_v3  ;;  %2399 = vmatprep.mubr.msk.bf16.mxu0 %vm2601_vm1, %v2600_v16 }
 0x239   :  { %2409 = vmatprep.subr.bf16.mxu0 %v2600_v16 }
 0x23b   :  { %2394 = vmatmul.mubr.msk.bf16.vlgmr.msra.gmra.mxu1 %vm780_vm2, %v771_v5 }
 0x23c   :  { %2404 = vmatpush3.bf16.msra.mxu1 %v1317_v6  ;;  %2405 = vmatprep.mubr.msk.bf16.mxu1 %vm2601_vm1, %v2600_v16 }
 0x23d   :  { %2415 = vmatprep.subr.bf16.mxu1 %v2600_v16 }
 0x2df   :  { %v821_v61 = vpop.f32.mrf.mxu0 }
 0x2e0   :  { %v1154_v10 = vsel %vm2897_vm4, %v821_v61, -1e+30 }
 0x2e1   :  { %v2353_v11 = vpop.f32.mrf.mxu0  ;;  %v1162_v12 = vsel %vm780_vm2, %v1154_v10, -inf }
 0x2e2   :  { %1163 = vmax.xlane.f32.xlu0 %v1162_v12 }
 0x2e3   :  { %v824_v13 = vpop.f32.mrf.mxu0  ;;  %v867_v14 = vpop.f32.mrf.mxu1 }
 0x2e4   :  { %v1155_v15 = vsel %vm2897_vm4, %v867_v14, -1e+30 }
 0x2e5   :  { %v2354_v17 = vpop.f32.mrf.mxu0  ;;  %v2359_v19 = vpop.f32.mrf.mxu1  ;;  %v1165_v20 = vsel %vm780_vm2, %v1155_v15, -inf }
 0x2e6   :  { %1166 = vmax.xlane.f32.xlu1 %v1165_v20 }
 0x2e7   :  { %v870_v21 = vpop.f32.mrf.mxu1  ;;  %v913_v22 = vpop.f32.mrf.mxu0 }
 0x2e8   :  { %v1156_v23 = vsel %vm2897_vm4, %v913_v22, -1e+30 }
 0x2e9   :  { %v2360_v25 = vpop.f32.mrf.mxu1  ;;  %v2365_v26 = vpop.f32.mrf.mxu0  ;;  %v1168_v27 = vsel %vm780_vm2, %v1156_v23, -inf }
 0x2ea   :  { %1169 = vmax.xlane.f32.xlu0 %v1168_v27 }
 0x2eb   :  { %v916_v28 = vpop.f32.mrf.mxu0  ;;  %v959_v29 = vpop.f32.mrf.mxu1 }
 0x2ec   :  { %v1157_v30 = vsel %vm2897_vm4, %v959_v29, -1e+30 }
 0x2ed   :  { %v2366_v32 = vpop.f32.mrf.mxu0  ;;  %v2371_v33 = vpop.f32.mrf.mxu1  ;;  %v1171_v34 = vsel %vm780_vm2, %v1157_v30, -inf }
 0x2ee   :  { %1172 = vmax.xlane.f32.xlu1 %v1171_v34 }
 0x2ef   :  { %v962_v35 = vpop.f32.mrf.mxu1  ;;  %v1005_v36 = vpop.f32.mrf.mxu0 }
 0x2f0   :  { %v1158_v37 = vsel %vm2897_vm4, %v1005_v36, -1e+30 }
 0x2f1   :  { %v2372_v39 = vpop.f32.mrf.mxu1  ;;  %v2377_v40 = vpop.f32.mrf.mxu0  ;;  %v1174_v41 = vsel %vm780_vm2, %v1158_v37, -inf }
 0x2f2   :  { %1175 = vmax.xlane.f32.xlu0 %v1174_v41 }
 0x2f3   :  { %v1008_v42 = vpop.f32.mrf.mxu0  ;;  %v1051_v43 = vpop.f32.mrf.mxu1 }
 0x2f4   :  { %v1159_v44 = vsel %vm2897_vm4, %v1051_v43, -1e+30 }
 0x2f5   :  { %v2378_v45 = vpop.f32.mrf.mxu0  ;;  %v2383_v46 = vpop.f32.mrf.mxu1  ;;  %v1177_v47 = vsel %vm780_vm2, %v1159_v44, -inf }
 0x2f6   :  { %1178 = vmax.xlane.f32.xlu1 %v1177_v47 }
 0x2f7   :  { %v1054_v48 = vpop.f32.mrf.mxu1  ;;  %v1097_v49 = vpop.f32.mrf.mxu0 }
 0x2f8   :  { %v1160_v50 = vsel %vm2897_vm4, %v1097_v49, -1e+30 }
 0x2f9   :  { %v2384_v51 = vpop.f32.mrf.mxu1  ;;  %v2389_v52 = vpop.f32.mrf.mxu0  ;;  %v1180_v53 = vsel %vm780_vm2, %v1160_v50, -inf }
 0x2fa   :  { %1181 = vmax.xlane.f32.xlu0 %v1180_v53 }
 0x2fb   :  { %v1100_v55 = vpop.f32.mrf.mxu0  ;;  %v1143_v56 = vpop.f32.mrf.mxu1 }
 0x2fc   :  { %v1161_v58 = vsel %vm2897_vm4, %v1143_v56, -1e+30 }
 0x2fd   :  { %v2390_v59 = vpop.f32.mrf.mxu0  ;;  %v2395_v62 = vpop.f32.mrf.mxu1  ;;  %v1183_v63 = vsel %vm780_vm2, %v1161_v58, -inf }
 0x2fe   :  { %1184 = vmax.xlane.f32.xlu1 %v1183_v63 }
 0x2ff   :  { %v1146_v0 = vpop.f32.mrf.mxu1 }
 0x301   :  { %v2396_v1 = vpop.f32.mrf.mxu1 }
 0x302   :  { %v1262_v1 = vpack.c.bf16 %v2860_v54, %v2860_v54 }
 0x36b   :  { %v1164_v2 = vpop.xlane.xlu0 %1163 }
 0x36c   :  { %v1186_v3 = vsub.f32 %v1154_v10, %v1164_v2 }
 0x36e   :  { %v1194_v4 = vmul.f32 1.442695, %v1186_v3 }
 0x36f   :  { %v1167_v5 = vpop.xlane.xlu1 %1166 }
 0x370   :  { %2540 = vpow2.f32 %v1194_v4  ;;  %v1187_v6 = vsub.f32 %v1155_v15, %v1167_v5  ;;  %v1455_v5 = vsel %vm1269_vm3, %v1262_v1, 0 }
 0x372   :  { %v1196_v57 = vmul.f32 1.442695, %v1187_v6  ;;  %v1263_v6 = vpack.c.bf16 %v2871_v60, %v2871_v60 }
 0x373   :  { %v1170_v7 = vpop.xlane.xlu0 %1169 }
 0x374   :  { %2542 = vpow2.f32 %v1196_v57  ;;  %v1188_v8 = vsub.f32 %v1156_v23, %v1170_v7 }
 0x376   :  { %v1198_v61 = vmul.f32 1.442695, %v1188_v8 }
 0x377   :  { %v1173_v9 = vpop.xlane.xlu1 %1172 }
 0x378   :  { %2544 = vpow2.f32 %v1198_v61  ;;  %v1189_v11 = vsub.f32 %v1157_v30, %v1173_v9  ;;  %v1264_v61 = vpack.c.bf16 %v2834_v31, %v2834_v31  ;;  %v1501_v9 = vsel %vm1269_vm3, %v1263_v6, 0 }
 0x37a   :  { %v1200_v12 = vmul.f32 1.442695, %v1189_v11 }
 0x37b   :  { %v1176_v13 = vpop.xlane.xlu0 %1175 }
 0x37c   :  { %2546 = vpow2.f32 %v1200_v12  ;;  %v1190_v14 = vsub.f32 %v1158_v37, %v1176_v13  ;;  %v1547_v13 = vsel %vm1269_vm3, %v1264_v61, 0 }
 0x37d   :  { %v2541_v17 = vpop.eup %2540 }
 0x37e   :  { %v1202_v19 = vmul.f32 1.442695, %v1190_v14  ;;  %v1210_v10 = vsel %vm780_vm2, %v2541_v17, 0.0  ;;  %v1265_v14 = vpack.c.bf16 %v2839_v38, %v2839_v38 }
 0x37f   :  { %v1179_v20 = vpop.xlane.xlu1 %1178  ;;  %1211 = vadd.xlane.f32.xlu0 %v1210_v10 }
 0x380   :  { %2548 = vpow2.f32 %v1202_v19  ;;  %v1191_v15 = vsub.f32 %v1159_v44, %v1179_v20  ;;  %v1593_v10 = vsel %vm1269_vm3, %v1265_v14, 0 }
 0x381   :  { %v2543_v21 = vpop.eup %2542 }
 0x382   :  { %v1204_v22 = vmul.f32 1.442695, %v1191_v15  ;;  %v1213_v23 = vsel %vm780_vm2, %v2543_v21, 0.0 }
 0x383   :  { %1214 = vadd.xlane.f32.xlu1 %v1213_v23  ;;  %v1182_v25 = vpop.xlane.xlu0 %1181  ;;  %v1639_v23 = vld [vmem:[%s3119_s3] sm:$0xf] }
 0x384   :  { %2550 = vpow2.f32 %v1204_v22  ;;  %v1192_v26 = vsub.f32 %v1160_v50, %v1182_v25  ;;  %v1260_v50 = vpack.c.bf16 %v2827_v18, %v2827_v18  ;;  %v1647_v25 = vsel %vm1269_vm3, %v1639_v23, 0 }
 0x385   :  { %v2545_v27 = vpop.eup %2544 }
 0x386   :  { %v1206_v28 = vmul.f32 1.442695, %v1192_v26  ;;  %v1216_v29 = vsel %vm780_vm2, %v2545_v27, 0.0  ;;  %v1363_v56 = vsel %vm1269_vm3, %v1260_v50, 0  ;;  %v1640_v26 = vld [vmem:[%s3119_s3 + $0x4] sm:$0xf] }
 0x387   :  { %v1185_v30 = vpop.xlane.xlu1 %1184  ;;  %1217 = vadd.xlane.f32.xlu0 %v1216_v29 }
 0x388   :  { %2552 = vpow2.f32 %v1206_v28  ;;  %v1193_v32 = vsub.f32 %v1161_v58, %v1185_v30  ;;  %v1261_v58 = vpack.c.bf16 %v2830_v24, %v2830_v24  ;;  %v1641_v30 = vld [vmem:[%s3119_s3 + $0x8] sm:$0xf] }
 0x389   :  { %v2547_v33 = vpop.eup %2546 }
 0x38a   :  { %v1208_v34 = vmul.f32 1.442695, %v1193_v32  ;;  %v1219_v35 = vsel %vm780_vm2, %v2547_v33, 0.0  ;;  %v1409_v0 = vsel %vm1269_vm3, %v1261_v58, 0 }
 0x38b   :  { %1220 = vadd.xlane.f32.xlu1 %v1219_v35  ;;  %v1741_v35 = vsel %vm1269_vm3, %v1641_v30, 0 }
 0x38c   :  { %2554 = vpow2.f32 %v1208_v34 }
 0x38d   :  { %v2929_v36 = vpop.eup %2548 }
 0x38e   :  { %v1222_v37 = vsel %vm780_vm2, %v2929_v36, 0.0 }
 0x38f   :  { %1223 = vadd.xlane.f32.xlu0 %v1222_v37 }
 0x391   :  { %v2933_v39 = vpop.eup %2550 }
 0x392   :  { %v1225_v40 = vsel %vm780_vm2, %v2933_v39, 0.0 }
 0x393   :  { %1226 = vadd.xlane.f32.xlu1 %v1225_v40 }
 0x395   :  { %v2937_v41 = vpop.eup %2552 }
 0x396   :  { %v1228_v42 = vsel %vm780_vm2, %v2937_v41, 0.0 }
 0x397   :  { %1229 = vadd.xlane.f32.xlu0 %v1228_v42 }
 0x399   :  { %v2941_v43 = vpop.eup %2554 }
 0x39a   :  { %v1231_v44 = vsel %vm780_vm2, %v2941_v43, 0.0 }
 0x39b   :  { %1232 = vadd.xlane.f32.xlu1 %v1231_v44 }
 0x408   :  { %v1212_v45 = vpop.xlane.xlu0 %1211 }
 0x409   :  { %2556 = vrcp.f32 %v1212_v45 }
 0x40c   :  { %v1215_v46 = vpop.xlane.xlu1 %1214 }
 0x40d   :  { %2558 = vrcp.f32 %v1215_v46 }
 0x410   :  { %v1218_v47 = vpop.xlane.xlu0 %1217 }
 0x411   :  { %2560 = vrcp.f32 %v1218_v47 }
 0x414   :  { %v1221_v48 = vpop.xlane.xlu1 %1220 }
 0x415   :  { %2562 = vrcp.f32 %v1221_v48 }
 0x416   :  { %v2557_v49 = vpop.eup %2556 }
 0x417   :  { %v1242_v51 = vmul.f32 %v2557_v49, %v2541_v17 }
 0x418   :  { %v1224_v52 = vpop.xlane.xlu0 %1223 }
 0x419   :  { %2564 = vrcp.f32 %v1224_v52  ;;  %v1250_v53 = vpack.c.bf16 %v1242_v51, %v1242_v51 }
 0x41a   :  { %v2559_v55 = vpop.eup %2558 }
 0x41b   :  { %2400 = vmatmul.mubr.msk.bf16.vlgmr.msra.gmra.mxu0 %vm780_vm2, %v1250_v53  ;;  %v1243_v59 = vmul.f32 %v2559_v55, %v2543_v21 }
 0x41c   :  { %2410 = vmatpush3.bf16.msra.mxu0 %v1363_v56  ;;  %v1227_v62 = vpop.xlane.xlu1 %1226  ;;  %2411 = vmatprep.mubr.msk.bf16.mxu0 %vm2601_vm1, %v2600_v16 }
 0x41d   :  { %2566 = vrcp.f32 %v1227_v62  ;;  %v1251_v18 = vpack.c.bf16 %v1243_v59, %v1243_v59  ;;  %2421 = vmatprep.subr.bf16.mxu0 %v2600_v16 }
 0x41e   :  { %v2561_v63 = vpop.eup %2560 }
 0x41f   :  { %2406 = vmatmul.mubr.msk.bf16.vlgmr.msra.gmra.mxu1 %vm780_vm2, %v1251_v18  ;;  %v1244_v24 = vmul.f32 %v2561_v63, %v2545_v27  ;;  %v1694_v27 = vsel %vm1269_vm3, %v1640_v26, 0  ;;  %v2149_v26 = vld [vmem:[%s3117_s1 + $0x4] ss:$0 sm:$0xff] }
 0x420   :  { %2416 = vmatpush3.bf16.msra.mxu1 %v1409_v0  ;;  %v1230_v2 = vpop.xlane.xlu0 %1229  ;;  %2417 = vmatprep.mubr.msk.bf16.mxu1 %vm2601_vm1, %v2600_v16 }
 0x421   :  { %2568 = vrcp.f32 %v1230_v2  ;;  %v1252_v3 = vpack.c.bf16 %v1244_v24, %v1244_v24  ;;  %2427 = vmatprep.subr.bf16.mxu1 %v2600_v16 }
 0x422   :  { %v2563_v4 = vpop.eup %2562 }
 0x423   :  { %2412 = vmatmul.mubr.msk.bf16.vlgmr.msra.gmra.mxu0 %vm780_vm2, %v1252_v3  ;;  %v1245_v54 = vmul.f32 %v2563_v4, %v2547_v33 }
 0x424   :  { %2422 = vmatpush3.bf16.msra.mxu0 %v1455_v5  ;;  %v1233_v57 = vpop.xlane.xlu1 %1232  ;;  %2423 = vmatprep.mubr.msk.bf16.mxu0 %vm2601_vm1, %v2600_v16 }
 0x425   :  { %2570 = vrcp.f32 %v1233_v57  ;;  %v1253_v7 = vpack.c.bf16 %v1245_v54, %v1245_v54  ;;  %2433 = vmatprep.subr.bf16.mxu0 %v2600_v16 }
 0x426   :  { %v2565_v8 = vpop.eup %2564 }
 0x427   :  { %2418 = vmatmul.mubr.msk.bf16.vlgmr.msra.gmra.mxu1 %vm780_vm2, %v1253_v7  ;;  %v1246_v60 = vmul.f32 %v2565_v8, %v2929_v36 }
 0x428   :  { %2428 = vmatpush3.bf16.msra.mxu1 %v1501_v9  ;;  %2429 = vmatprep.mubr.msk.bf16.mxu1 %vm2601_vm1, %v2600_v16 }
 0x429   :  { %v1254_v11 = vpack.c.bf16 %v1246_v60, %v1246_v60  ;;  %2439 = vmatprep.subr.bf16.mxu1 %v2600_v16 }
 0x42a   :  { %v2567_v12 = vpop.eup %2566 }
 0x42b   :  { %2424 = vmatmul.mubr.msk.bf16.vlgmr.msra.gmra.mxu0 %vm780_vm2, %v1254_v11  ;;  %v1247_v31 = vmul.f32 %v2567_v12, %v2933_v39 }
 0x42c   :  { %2434 = vmatpush3.bf16.msra.mxu0 %v1547_v13  ;;  %2435 = vmatprep.mubr.msk.bf16.mxu0 %vm2601_vm1, %v2600_v16 }
 0x42d   :  { %v1255_v17 = vpack.c.bf16 %v1247_v31, %v1247_v31  ;;  %2445 = vmatprep.subr.bf16.mxu0 %v2600_v16 }
 0x42e   :  { %v2569_v19 = vpop.eup %2568 }
 0x42f   :  { %2430 = vmatmul.mubr.msk.bf16.vlgmr.msra.gmra.mxu1 %vm780_vm2, %v1255_v17  ;;  %v1248_v20 = vmul.f32 %v2569_v19, %v2937_v41 }
 0x430   :  { %2440 = vmatpush3.bf16.msra.mxu1 %v1593_v10  ;;  %2441 = vmatprep.mubr.msk.bf16.mxu1 %vm2601_vm1, %v2600_v16 }
 0x431   :  { %v1256_v38 = vpack.c.bf16 %v1248_v20, %v1248_v20  ;;  %2451 = vmatprep.subr.bf16.mxu1 %v2600_v16 }
 0x432   :  { %v2571_v15 = vpop.eup %2570 }
 0x433   :  { %2436 = vmatmul.mubr.msk.bf16.vlgmr.msra.gmra.mxu0 %vm780_vm2, %v1256_v38  ;;  %v1249_v21 = vmul.f32 %v2571_v15, %v2941_v43  ;;  %v1642_v43 = vld [vmem:[%s3119_s3 + $0xc] sm:$0xf] }
 0x434   :  { %2447 = vmatprep.mubr.msk.bf16.mxu0 %vm2601_vm1, %v2600_v16  ;;  %2446 = vmatpush3.bf16.msra.mxu0 %v1647_v25  ;;  %v1788_v47 = vsel %vm1269_vm3, %v1642_v43, 0  ;;  %v2577_v43 = vld [vmem:[%s3116_s0 + $0x8] sm:$0xff] }
 0x435   :  { %v1257_v22 = vpack.c.bf16 %v1249_v21, %v1249_v21  ;;  %2457 = vmatprep.subr.bf16.mxu0 %v2600_v16 }
 0x437   :  { %2442 = vmatmul.mubr.msk.bf16.vlgmr.msra.gmra.mxu1 %vm780_vm2, %v1257_v22 }
 0x438   :  { %2453 = vmatprep.mubr.msk.bf16.mxu1 %vm2601_vm1, %v2600_v16  ;;  %2452 = vmatpush3.bf16.msra.mxu1 %v1694_v27 }
 0x439   :  { %2463 = vmatprep.subr.bf16.mxu1 %v2600_v16 }
 0x4db   :  { %v1307_v28 = vpop.f32.mrf.mxu0 }
 0x4dd   :  { %v2401_v29 = vpop.f32.mrf.mxu0 }
 0x4df   :  { %v1310_v32 = vpop.f32.mrf.mxu0  ;;  %v1353_v33 = vpop.f32.mrf.mxu1 }
 0x4e0   :  { %v1635_v34 = vpack.c.bf16 %v1353_v33, %v1307_v28 }
 0x4e1   :  { %v2402_v36 = vpop.f32.mrf.mxu0  ;;  %v2407_v37 = vpop.f32.mrf.mxu1 }
 0x4e2   :  { %2448 = vmatmul.mubr.msk.bf16.vlgmr.msra.gmra.mxu0 %vm780_vm2, %v1635_v34 }
 0x4e3   :  { %v1356_v39 = vpop.f32.mrf.mxu1  ;;  %v1399_v40 = vpop.f32.mrf.mxu0  ;;  %2458 = vmatpush3.bf16.msra.mxu0 %v1741_v35  ;;  %2459 = vmatprep.mubr.msk.bf16.mxu0 %vm2601_vm1, %v2600_v16 }
 0x4e4   :  { %2469 = vmatprep.subr.bf16.mxu0 %v2600_v16  ;;  %v2576_v39 = vld [vmem:[%s3116_s0] sm:$0xff] }
 0x4e5   :  { %v2408_v41 = vpop.f32.mrf.mxu1  ;;  %v2413_v42 = vpop.f32.mrf.mxu0 }
 0x4e7   :  { %v1402_v44 = vpop.f32.mrf.mxu0  ;;  %v1445_v45 = vpop.f32.mrf.mxu1 }
 0x4e8   :  { %v1636_v46 = vpack.c.bf16 %v1445_v45, %v1399_v40 }
 0x4e9   :  { %v2414_v48 = vpop.f32.mrf.mxu0  ;;  %v2419_v49 = vpop.f32.mrf.mxu1 }
 0x4ea   :  { %2454 = vmatmul.mubr.msk.bf16.vlgmr.msra.gmra.mxu1 %vm780_vm2, %v1636_v46 }
 0x4eb   :  { %v1448_v50 = vpop.f32.mrf.mxu1  ;;  %v1491_v51 = vpop.f32.mrf.mxu0  ;;  %2464 = vmatpush3.bf16.msra.mxu1 %v1788_v47  ;;  %2465 = vmatprep.mubr.msk.bf16.mxu1 %vm2601_vm1, %v2600_v16 }
 0x4ec   :  { %2477 = vmatprep.subr.bf16.mxu1 %v2600_v16 }
 0x4ed   :  { %v2420_v52 = vpop.f32.mrf.mxu1  ;;  %v2425_v53 = vpop.f32.mrf.mxu0 }
 0x4ef   :  { %v1494_v55 = vpop.f32.mrf.mxu0  ;;  %v1537_v56 = vpop.f32.mrf.mxu1 }
 0x4f0   :  { %v1637_v58 = vpack.c.bf16 %v1537_v56, %v1491_v51 }
 0x4f1   :  { %v2426_v59 = vpop.f32.mrf.mxu0  ;;  %v2431_v62 = vpop.f32.mrf.mxu1 }
 0x4f2   :  { %2460 = vmatmul.mubr.msk.bf16.vlgmr.msra.gmra.mxu0 %vm780_vm2, %v1637_v58  ;;  %v2526_v58 = vld [vmem:[%s3121_s5 + $0x8] sm:$0xff]   ;;  %v2527_v59 = vld [vmem:[%s3121_s5] sm:$0xff]   ;;  %v2528_v62 = vld [vmem:[%s3122_s6 + $0x38] sm:$0xff]  }
 0x4f3   :  { %v1540_v18 = vpop.f32.mrf.mxu1  ;;  %v1583_v63 = vpop.f32.mrf.mxu0  ;;  %2473 = vmatprep.mubr.msk.bf16.mxu0 %vm2601_vm1, %v2600_v16  ;;  %2470 = vmatpush3.bf16.msra.mxu0 %v2526_v58 }
 0x4f4   :  { %2471 = vmatprep.subr.bf16.mxu0 %v2600_v16  ;;  %v2529_v18 = vld [vmem:[%s3122_s6 + $0x30] sm:$0xff]  }
 0x4f5   :  { %v2432_v0 = vpop.f32.mrf.mxu1  ;;  %v2437_v1 = vpop.f32.mrf.mxu0 }
 0x4f6   :  { %v2531_v0 = vld [vmem:[%s3122_s6 + $0x20] sm:$0xff]   ;;  %v2532_v1 = vld [vmem:[%s3122_s6 + $0x18] sm:$0xff]  }
 0x4f7   :  { %v1586_v24 = vpop.f32.mrf.mxu0  ;;  %v1629_v2 = vpop.f32.mrf.mxu1  ;;  %2472 = vmatpush3.bf16.msra.mxu0 %v2527_v59 }
 0x4f8   :  { %v1638_v3 = vpack.c.bf16 %v1629_v2, %v1583_v63  ;;  %v2530_v63 = vld [vmem:[%s3122_s6 + $0x28] sm:$0xff]  }
 0x4f9   :  { %v2438_v4 = vpop.f32.mrf.mxu0  ;;  %v2443_v5 = vpop.f32.mrf.mxu1 }
 0x4fa   :  { %2466 = vmatmul.mubr.msk.bf16.vlgmr.msra.gmra.mxu1 %vm780_vm2, %v1638_v3 }
 0x4fb   :  { %v1632_v6 = vpop.f32.mrf.mxu1  ;;  %2493 = vmatprep.mubr.msk.bf16.mxu1 %vm2601_vm1, %v2600_v16  ;;  %2478 = vmatpush3.bf16.msra.mxu1 %v2528_v62 }
 0x4fc   :  { %2479 = vmatprep.subr.bf16.mxu1 %v2600_v16 }
 0x4fd   :  { %v2444_v54 = vpop.f32.mrf.mxu1 }
 0x4ff   :  { %2480 = vmatpush3.bf16.msra.mxu1 %v2529_v18 }
 0x500   :  { %2481 = vmatprep.subr.bf16.mxu1 %v2600_v16 }
 0x503   :  { %2482 = vmatpush3.bf16.msra.mxu1 %v2530_v63 }
 0x504   :  { %2483 = vmatprep.subr.bf16.mxu1 %v2600_v16 }
 0x507   :  { %2484 = vmatpush3.bf16.msra.mxu1 %v2531_v0 }
 0x508   :  { %2485 = vmatprep.subr.bf16.mxu1 %v2600_v16 }
 0x50b   :  { %2486 = vmatpush3.bf16.msra.mxu1 %v2532_v1 }
 0x50c   :  { %2487 = vmatprep.subr.bf16.mxu1 %v2600_v16 }
 0x5a2   :  { %v1683_v57 = vpop.f32.mrf.mxu0 }
 0x5a3   :  { %v1831_v19 = vsel %vm36_vm0, %v1683_v57, 0.0 }
 0x5a4   :  { %v2449_v7 = vpop.f32.mrf.mxu0 }
 0x5a5   :  { %v2150_v7 = vld [vmem:[%s3117_s1 + $0x2] ss:$0 sm:$0xff] }
 0x5a6   :  { %v1686_v8 = vpop.f32.mrf.mxu0 }
 0x5a7   :  { %v1838_v23 = vsel %vm36_vm0, %v1686_v8, 0.0 }
 0x5a8   :  { %v2450_v61 = vpop.f32.mrf.mxu0 }
 0x5aa   :  { %v1730_v9 = vpop.f32.mrf.mxu1 }
 0x5ab   :  { %v1832_v31 = vsel %vm36_vm0, %v1730_v9, 0.0 }
 0x5ac   :  { %v2455_v60 = vpop.f32.mrf.mxu1  ;;  %v1833_v20 = vadd.f32 %v1832_v31, %v1831_v19  ;;  %v2533_v31 = vld [vmem:[%s3122_s6 + $0x10] sm:$0xff]   ;;  %v2535_v19 = vld [vmem:[%s3122_s6] sm:$0xff]  }
 0x5ad   :  { %v2151_v60 = vld [vmem:[%s3117_s1 + $0x3] ss:$0 sm:$0xff]  ;;  %2488 = vmatpush3.bf16.msra.mxu1 %v2533_v31 }
 0x5ae   :  { %v1733_v11 = vpop.f32.mrf.mxu1  ;;  %2489 = vmatprep.subr.bf16.mxu1 %v2600_v16 }
 0x5af   :  { %v1839_v15 = vsel %vm36_vm0, %v1733_v11, 0.0 }
 0x5b0   :  { %v2456_v12 = vpop.f32.mrf.mxu1  ;;  %v1840_v28 = vadd.f32 %v1839_v15, %v1838_v23 }
 0x5b2   :  { %v1777_v13 = vpop.f32.mrf.mxu0 }
 0x5b3   :  { %v1834_v10 = vsel %vm36_vm0, %v1777_v13, 0.0 }
 0x5b4   :  { %v2461_v14 = vpop.f32.mrf.mxu0  ;;  %v1835_v21 = vadd.f32 %v1834_v10, %v1833_v20  ;;  %v2152_v10 = vld [vmem:[%s3120_s4] ss:$0 sm:$0xff]  ;;  %s2602_s4 = smov [#allocation2]  }
 0x5b6   :  { %v1780_v17 = vpop.f32.mrf.mxu0 }
 0x5b7   :  { %v1841_v25 = vsel %vm36_vm0, %v1780_v17, 0.0  ;;  %v2534_v17 = vld [vmem:[%s3122_s6 + $0x8] sm:$0xff]   ;;  %s2080_s6 = sshll.u32 %s2602_s4, 4  ;;  %s2081_s6 = int_to_ptr.vmem [resolvable:$true] %s2080_s6 }
 0x5b8   :  { %v2462_v38 = vpop.f32.mrf.mxu0  ;;  %v1842_v32 = vadd.f32 %v1841_v25, %v1840_v28  ;;  %2490 = vmatpush3.bf16.msra.mxu1 %v2534_v17  ;;  %s2578_s23 = scalar_lea.vmem %s2081_s6, 256  ;;  %p2583_p1 = scmp.lt.s32.totalorder %s2081_s6, %s2081_s6 }
 0x5b9   :  { %2491 = vmatprep.subr.bf16.mxu1 %v2600_v16  ;;  %v2156_v16 = vld [vmem:[%s3117_s1 + $0x5] ss:$0 sm:$0xff]  ;;  %p2579_p0 = scmp.ne.s32.totalorder %s2081_s6, %s2578_s23  ;;  %p2584_p2 = scmp.lt.s32.totalorder %s2578_s23, %s2578_s23 }
 0x5ba   :  { %v1824_v22 = vpop.f32.mrf.mxu1 }
 0x5bb   :  { %v1836_v27 = vsel %vm36_vm0, %v1824_v22, 0.0  ;;  %p2585_p3 = por %p2584_p2, %p2583_p1 }
 0x5bc   :  { %v1837_v29 = vadd.f32 %v1836_v27, %v1835_v21  ;;  %v2467_v30 = vpop.f32.mrf.mxu1  ;;  %2492 = vmatpush3.bf16.msra.mxu1 %v2535_v19 }
 0x5bd   :  { %p2586_p4 = pnand %p2585_p3, %p2579_p0 }
 0x5be   :  { %v1849_v33 = vadd.f32 %v2149_v26, %v1837_v29  ;;  %v1827_v34 = vpop.f32.mrf.mxu1 }
 0x5bf   :  { %v1843_v35 = vsel %vm36_vm0, %v1827_v34, 0.0 }
 0x5c0   :  { %v1844_v36 = vadd.f32 %v1843_v35, %v1842_v32  ;;  %v2468_v37 = vpop.f32.mrf.mxu1  ;;  %v3043_v40 = vadd.f32 %v2576_v39, %v1849_v33 }
 0x5c2   :  { %v1850_v41 = vadd.f32 %v2149_v26, %v1844_v36  ;;  %v1853_v42 = vsel %vm36_vm0, %v3043_v40, 0.0 }
 0x5c3   :  { %1854 = vadd.xlane.f32.xlu0 %v1853_v42 }
 0x5c4   :  { %v3050_v44 = vadd.f32 %v2577_v43, %v1850_v41 }
 0x5c6   :  { %v1856_v45 = vsel %vm36_vm0, %v3050_v44, 0.0 }
 0x5c7   :  { %1857 = vadd.xlane.f32.xlu1 %v1856_v45 }
 0x64c   :  { %v1855_v46 = vpop.xlane.xlu0 %1854 }
 0x64d   :  { %v1859_v47 = vmul.f32 0.03125, %v1855_v46 }
 0x64f   :  { %v1861_v48 = vsub.f32 %v3043_v40, %v1859_v47 }
 0x650   :  { %v1858_v49 = vpop.xlane.xlu1 %1857 }
 0x651   :  { %v1860_v50 = vmul.f32 0.03125, %v1858_v49  ;;  %v1863_v51 = vmul.f32 %v1861_v48, %v1861_v48 }
 0x653   :  { %v1862_v52 = vsub.f32 %v3050_v44, %v1860_v50  ;;  %v1865_v53 = vsel %vm36_vm0, %v1863_v51, 0.0 }
 0x654   :  { %1866 = vadd.xlane.f32.xlu0 %v1865_v53 }
 0x655   :  { %v1864_v55 = vmul.f32 %v1862_v52, %v1862_v52 }
 0x657   :  { %v1868_v56 = vsel %vm36_vm0, %v1864_v55, 0.0 }
 0x658   :  { %1869 = vadd.xlane.f32.xlu1 %v1868_v56 }
 0x6dd   :  { %v1867_v24 = vpop.xlane.xlu0 %1866 }
 0x6de   :  { %v1871_v2 = vmul.f32 0.03125, %v1867_v24 }
 0x6e0   :  { %v1873_v3 = vadd.f32 1e-05, %v1871_v2 }
 0x6e1   :  { %v1870_v4 = vpop.xlane.xlu1 %1869 }
 0x6e2   :  { %2572 = vrsqrt.f32 %v1873_v3  ;;  %v1872_v5 = vmul.f32 0.03125, %v1870_v4 }
 0x6e4   :  { %v1874_v6 = vadd.f32 1e-05, %v1872_v5 }
 0x6e6   :  { %2574 = vrsqrt.f32 %v1874_v6 }
 0x6ef   :  { %v2573_v54 = vpop.eup %2572 }
 0x6f0   :  { %v1877_v57 = vmul.f32 %v2573_v54, %v1861_v48 }
 0x6f2   :  { %v1883_v9 = vmul.f32 %v2150_v7, %v1877_v57 }
 0x6f3   :  { %v2575_v8 = vpop.eup %2574 }
 0x6f4   :  { %v1878_v61 = vmul.f32 %v2575_v8, %v1862_v52  ;;  %v1889_v12 = vadd.f32 %v2151_v60, %v1883_v9 }
 0x6f6   :  { %v1884_v11 = vmul.f32 %v2150_v7, %v1878_v61 }
 0x6f8   :  { %v1890_v13 = vadd.f32 %v2151_v60, %v1884_v11 }
 0x6fa   :  { %v1891_v14 = vpack.c.bf16 %v1890_v13, %v1889_v12 }
 0x6fc   :  { %2474 = vmatmul.mubr.msk.bf16.vlgmr.msra.gmra.mxu0 %vm36_vm0, %v1891_v14 }
 0x7bc   :  { %v1952_v20 = vpop.f32.mrf.mxu0 }
 0x7bd   :  { %v1953_v15 = vadd.f32 %v2152_v10, %v1952_v20 }
 0x7be   :  { %v2475_v38 = vpop.f32.mrf.mxu0 }
 0x7bf   :  { %v1959_v25 = vmax.f32 %v1953_v15, 0.0 }
 0x7c0   :  { %v1955_v21 = vpop.f32.mrf.mxu0 }
 0x7c1   :  { %v1956_v22 = vadd.f32 %v2152_v10, %v1955_v21 }
 0x7c2   :  { %v2476_v23 = vpop.f32.mrf.mxu0 }
 0x7c3   :  { %v1960_v26 = vmax.f32 %v1956_v22, 0.0 }
 0x7c5   :  { %v1961_v27 = vpack.c.bf16 %v1960_v26, %v1959_v25 }
 0x7c7   :  { %2494 = vmatmul.mubr.bf16.vlgmr.msra.gmra.mxu1 %v1961_v27 }
 0x887   :  { %v2064_v28 = vpop.f32.mrf.mxu1 }
 0x888   :  { %v2065_v29 = vadd.f32 %v2156_v16, %v2064_v28 }
 0x889   :  { %v2495_v30 = vpop.f32.mrf.mxu1 }
 0x88a   :  { %v2071_v32 = vadd.f32 %v2065_v29, %v3043_v40 }
 0x88b   :  { %v2067_v33 = vpop.f32.mrf.mxu1 }
 0x88c   :  { %2073 = vst.msk [vmem:[#allocation2] sm:$0xff] %vm36_vm0, %v2071_v32  ;;  %v2068_v34 = vadd.f32 %v2156_v16, %v2067_v33 }
 0x88d   :  { %v2496_v35 = vpop.f32.mrf.mxu1 }
 0x88e   :  { %v2072_v36 = vadd.f32 %v2068_v34, %v3050_v44 }
 0x890   :  { %2074 = vst.msk [vmem:[#allocation2 + $0x8] sm:$0xff] %vm36_vm0, %v2072_v36 }
 0x891   :  { %2589 = shalt.err (!%p2586_p4)
}
 0x892   :  { %s2603_s1 = smov 128   ;;  %s2604_s24 = smov 8  }
 0x893   :  { %2086 = dma.vmem_to_hbm [thread:$0]  %s2081_s6, 256, %s3123_s7, [#allocation3], %s2603_s1, %s2603_s1, %s2604_s24  }
 0x894   :  { %2598 = dma.done.wait [#allocation3], 256  }
 0x895   :  { %2599 = vsyncadd [#allocation3], 4294967040 }
 0x896   :  { %2090 = vsyncpa [#allocation3], 1 }

</bundles_post_ra>
